<compile_context>
chip_gen: v5e
topology: v5e:2x2
jax: 0.10.0
libtpu: 0.0.40
codegen_flags: <defaults>
</compile_context>

<pallas_src>
import jax
import jax.numpy as jnp
from jax.experimental import pallas as pl
from jax.experimental.pallas import tpu as pltpu


def _lca_kernel(x_ref, cct_ref, ccr_ref, wq_ref, wk_ref, wv_ref, wp_ref, bp_ref,
                kmask_ref, vmask_ref, seg_ref, bbias_ref, o_ref):
    f32 = jnp.float32
    bf16 = jnp.bfloat16

    # Projections: bf16 operands, f32 accumulation. qk scale folded into Wq,
    # fused kv weight pre-split in the wrapper.
    q = jnp.dot(x_ref[...], wq_ref[...], preferred_element_type=f32)        # (TM, C)
    k_rep = jnp.dot(wk_ref[...], cct_ref[...], preferred_element_type=f32)  # (C, B*H*N2): k^T per (batch,head) block
    v_rep = jnp.dot(ccr_ref[...], wv_ref[...], preferred_element_type=f32)  # (B*H*N2, C): v per (batch,head) block

    # Block-diagonalize over head blocks with precomputed constant masks
    # (hoisted to the wrapper; just one VPU multiply each here).
    k_bd = (k_rep * kmask_ref[...]).astype(bf16)                            # (C, BHN2)
    v_bd = (v_rep * vmask_ref[...]).astype(bf16)                            # (BHN2, C)

    # Fold the output projection into V, off the softmax critical path:
    #   (attn @ V_bd) @ Wp^T == attn @ (V_bd @ Wp^T)
    vw = jnp.dot(v_bd, wp_ref[...], preferred_element_type=f32).astype(bf16)  # (BHN2, C)

    # All batches x heads of scores in one lane-dense 128-wide matmul.
    s = jnp.dot(q.astype(bf16), k_bd, preferred_element_type=f32)           # (TM, BHN2)
    # Additive batch mask (0 for same-batch columns, -1e9 otherwise): cross-batch
    # entries underflow to exactly 0 in exp(), so they never reach the
    # denominator or attn @ V -- no batch mixing.
    s = s + bbias_ref[...]

    # Segmented (per batch x head) softmax. Subtracting the row max over valid
    # columns is an exact shift; per-segment denominators are broadcast back
    # via a 0/1 indicator matmul (stays lane-dense, runs on the MXU).
    m = jnp.max(s, axis=-1, keepdims=True)
    e = jnp.exp(s - m)
    denom = jnp.dot(e.astype(bf16), seg_ref[...], preferred_element_type=f32)
    # Guard: a head whose logits sit far below the row-wide max could underflow
    # its whole segment (denom -> 0); clamp so the approx reciprocal never sees 0.
    denom = jnp.maximum(denom, jnp.float32(1e-20))
    attn = e * pl.reciprocal(denom, approx=True)
    # attn_drop / proj_drop are p=0.0 in the module defaults -> identity.

    # Weighted projected values; block-diagonal V merges heads back into (TM, C).
    y = jnp.dot(attn.astype(bf16), vw, preferred_element_type=f32) + bp_ref[...]
    o_ref[...] = y.astype(o_ref.dtype)


def local_cross_attention(x, cluster_centers, params, *, num_heads, qk_scale=None):
    B, N1, C = x.shape
    B2, N2, _ = cluster_centers.shape
    assert B == B2, 'wrong number of input tensors'
    assert C % num_heads == 0
    head_dim = C // num_heads
    scale = qk_scale if qk_scale is not None else head_dim ** (-0.5)
    nh = num_heads
    HN2 = nh * N2
    BHN2 = B * HN2
    BN1 = B * N1
    f32, bf16 = jnp.float32, jnp.bfloat16

    # ---- wrapper-side prep (tiny constants & layout plumbing, folded by XLA) ----
    wq_t = (params['wq'].T * scale).astype(bf16)     # (C, C), scale folded in
    wk = params['wkv'][:C, :].astype(bf16)           # (C, C) torch layout: k^T = Wk @ cc^T
    wv_t = params['wkv'][C:, :].T.astype(bf16)       # (C, C)
    wp_t = params['wp'].T.astype(bf16)               # (C, C)
    bp = params['bp'].reshape(1, C).astype(f32)

    # Batch-folded, per-(batch,head) replicated cluster centers:
    #   cct_rep[c, b*HN2 + h*N2 + j] = cc[b, j, c]
    #   cc_rep [b*HN2 + h*N2 + j, c] = cc[b, j, c]
    cct_rep = jnp.tile(jnp.swapaxes(cluster_centers, 1, 2), (1, 1, nh))   # (B, C, HN2)
    cct_rep = jnp.moveaxis(cct_rep, 0, 1).reshape(C, BHN2).astype(bf16)   # (C, BHN2)
    cc_rep = jnp.tile(cluster_centers, (1, nh, 1)).reshape(BHN2, C).astype(bf16)

    # Queries folded over batch: row = b*N1 + t.
    x2d = x.reshape(BN1, C).astype(bf16)

    # Constant masks (hoisted out of the kernel body; XLA folds them once).
    feat_head = jnp.arange(C) // head_dim                  # head of each feature
    col_head = (jnp.arange(BHN2) % HN2) // N2              # head of each folded K/V column
    kmask = (feat_head[:, None] == col_head[None, :]).astype(f32)        # (C, BHN2)
    vmask = (col_head[:, None] == feat_head[None, :]).astype(f32)        # (BHN2, C)
    seg_id = jnp.arange(BHN2) // N2                        # (batch, head) segment id
    seg = (seg_id[:, None] == seg_id[None, :]).astype(bf16)              # (BHN2, BHN2)
    row_batch = jnp.arange(BN1) // N1
    col_batch = jnp.arange(BHN2) // HN2
    bbias = jnp.where(row_batch[:, None] == col_batch[None, :],
                      0.0, -1e9).astype(f32)                             # (BN1, BHN2)

    # Grid over query-row halves: keeps both v7x TensorCores busy while every
    # intermediate stays 128 lanes wide; on single-TC v5e/v6e the extra step is
    # sub-microsecond. Fall back to one step if rows don't split (8|TM) cleanly.
    if BN1 % 2 == 0 and (BN1 // 2) % 8 == 0:
        n_blocks = 2
    else:
        n_blocks = 1
    TM = BN1 // n_blocks

    out2d = pl.pallas_call(
        _lca_kernel,
        out_shape=jax.ShapeDtypeStruct((BN1, C), x.dtype),
        grid_spec=pltpu.PrefetchScalarGridSpec(
            num_scalar_prefetch=0,
            grid=(n_blocks,),
            in_specs=[
                pl.BlockSpec((TM, C), lambda i: (i, 0)),        # x (folded query rows)
                pl.BlockSpec((C, BHN2), lambda i: (0, 0)),      # cc^T replicated per (batch,head)
                pl.BlockSpec((BHN2, C), lambda i: (0, 0)),      # cc replicated per (batch,head)
                pl.BlockSpec((C, C), lambda i: (0, 0)),         # Wq^T * scale
                pl.BlockSpec((C, C), lambda i: (0, 0)),         # Wk (torch layout)
                pl.BlockSpec((C, C), lambda i: (0, 0)),         # Wv^T
                pl.BlockSpec((C, C), lambda i: (0, 0)),         # Wp^T
                pl.BlockSpec((1, C), lambda i: (0, 0)),         # proj bias
                pl.BlockSpec((C, BHN2), lambda i: (0, 0)),      # head-block mask for K^T
                pl.BlockSpec((BHN2, C), lambda i: (0, 0)),      # head-block mask for V
                pl.BlockSpec((BHN2, BHN2), lambda i: (0, 0)),   # softmax segment indicator
                pl.BlockSpec((TM, BHN2), lambda i: (i, 0)),     # additive cross-batch bias
            ],
            out_specs=pl.BlockSpec((TM, C), lambda i: (i, 0)),
        ),
        compiler_params=pltpu.CompilerParams(
            dimension_semantics=("parallel",)),   # row halves are independent
    )(x2d, cct_rep, cc_rep, wq_t, wk, wv_t, wp_t, bp,
      kmask, vmask, seg, bbias)

    return out2d.reshape(B, N1, C)


def reference_jax(x, cc, params, *, num_heads, qk_scale=None):
    """Plain-JAX mirror of the PyTorch forward, for correctness checking."""
    B, N1, C = x.shape
    _, N2, _ = cc.shape
    hd = C // num_heads
    scale = qk_scale if qk_scale is not None else hd ** (-0.5)
    q = (x @ params['wq'].T).reshape(B, N1, num_heads, hd).transpose(0, 2, 1, 3)
    kv = (cc @ params['wkv'].T).reshape(B, N2, 2, num_heads, hd).transpose(2, 0, 3, 1, 4)
    k, v = kv[0], kv[1]
    attn = (q @ jnp.swapaxes(k, -2, -1)) * scale
    attn = jax.nn.softmax(attn, axis=-1)
    out = (attn @ v).transpose(0, 2, 1, 3).reshape(B, N1, C)
    return out @ params['wp'].T + params['bp']


if __name__ == "__main__":
    # Small shapes consistent with the module: dim=32, num_heads=8,
    # queries = 8x8 = 64 tokens, 8 cluster centers, batch 2.
    B, H_sp, W_sp, C = 2, 8, 8, 32
    num_heads = 8
    N1 = H_sp * W_sp
    N2 = 8
    # window sizes / H / W / stage do not enter the forward math.

    key = jax.random.PRNGKey(0)
    kx, kc, kq, kkv, kp = jax.random.split(key, 5)

    x = jax.random.normal(kx, (B, N1, C), dtype=jnp.float32)
    cluster_centers = jax.random.normal(kc, (B, N2, C), dtype=jnp.float32)

    # Deterministic parameter init (trunc_normal std=0.02 approximated by
    # normal*0.02; biases zero -- matches the module's _init_weights intent).
    params = {
        'wq': 0.02 * jax.random.normal(kq, (C, C), dtype=jnp.float32),        # nn.Linear(dim, dim, bias=False)
        'wkv': 0.02 * jax.random.normal(kkv, (2 * C, C), dtype=jnp.float32),  # nn.Linear(dim, 2*dim, bias=False)
        'wp': 0.02 * jax.random.normal(kp, (C, C), dtype=jnp.float32),        # nn.Linear(dim, dim)
        'bp': jnp.zeros((C,), dtype=jnp.float32),
    }

    out = local_cross_attention(x, cluster_centers, params, num_heads=num_heads)
    out = jax.block_until_ready(out)

    ref = reference_jax(x, cluster_centers, params, num_heads=num_heads)
    assert out.shape == (B, N1, C)
    # Tolerance covers bf16 MXU operands (f32 accumulation) + approx EUP reciprocal.
    assert jnp.allclose(out, ref, atol=1e-3, rtol=1e-2), "mismatch vs reference"

    print("KERNEL_OK")
</pallas_src>

<mosaic_0001>
module attributes {stable_mosaic.version = 11 : i64} {
  func.func @_lca_kernel(%arg0: i32, %arg1: memref<64x32xbf16, #tpu.memory_space<vmem>>, %arg2: memref<32x128xbf16, #tpu.memory_space<vmem>>, %arg3: memref<128x32xbf16, #tpu.memory_space<vmem>>, %arg4: memref<32x32xbf16, #tpu.memory_space<vmem>>, %arg5: memref<32x32xbf16, #tpu.memory_space<vmem>>, %arg6: memref<32x32xbf16, #tpu.memory_space<vmem>>, %arg7: memref<32x32xbf16, #tpu.memory_space<vmem>>, %arg8: memref<1x32xf32, #tpu.memory_space<vmem>>, %arg9: memref<32x128xf32, #tpu.memory_space<vmem>>, %arg10: memref<128x32xf32, #tpu.memory_space<vmem>>, %arg11: memref<128x128xbf16, #tpu.memory_space<vmem>>, %arg12: memref<64x128xf32, #tpu.memory_space<vmem>>, %arg13: memref<64x32xf32, #tpu.memory_space<vmem>>) attributes {dimension_semantics = [#tpu.dimension_semantics<parallel>], iteration_bounds = array<i64: 2>, scalar_prefetch = 0 : i64, scratch_operands = 0 : i64, tpu.core_type = #tpu.core_type<tc>, window_params = [{transform_indices = @transform_0, window_bounds = array<i64: 64, 32>}, {pipeline_mode = #tpu.pipeline_mode<synchronous>, transform_indices = @transform_1, window_bounds = array<i64: 32, 128>}, {pipeline_mode = #tpu.pipeline_mode<synchronous>, transform_indices = @transform_2, window_bounds = array<i64: 128, 32>}, {pipeline_mode = #tpu.pipeline_mode<synchronous>, transform_indices = @transform_3, window_bounds = array<i64: 32, 32>}, {pipeline_mode = #tpu.pipeline_mode<synchronous>, transform_indices = @transform_4, window_bounds = array<i64: 32, 32>}, {pipeline_mode = #tpu.pipeline_mode<synchronous>, transform_indices = @transform_5, window_bounds = array<i64: 32, 32>}, {pipeline_mode = #tpu.pipeline_mode<synchronous>, transform_indices = @transform_6, window_bounds = array<i64: 32, 32>}, {pipeline_mode = #tpu.pipeline_mode<synchronous>, transform_indices = @transform_7, window_bounds = array<i64: 1, 32>}, {pipeline_mode = #tpu.pipeline_mode<synchronous>, transform_indices = @transform_8, window_bounds = array<i64: 32, 128>}, {pipeline_mode = #tpu.pipeline_mode<synchronous>, transform_indices = @transform_9, window_bounds = array<i64: 128, 32>}, {pipeline_mode = #tpu.pipeline_mode<synchronous>, transform_indices = @transform_10, window_bounds = array<i64: 128, 128>}, {transform_indices = @transform_11, window_bounds = array<i64: 64, 128>}, {transform_indices = @transform_12, window_bounds = array<i64: 64, 32>}]} {
    %c0 = arith.constant 0 : index
    %c0_0 = arith.constant 0 : index
    %0 = vector.load %arg1[%c0, %c0_0] : memref<64x32xbf16, #tpu.memory_space<vmem>>, vector<64x32xbf16>
    %c0_1 = arith.constant 0 : index
    %c0_2 = arith.constant 0 : index
    %1 = vector.load %arg4[%c0_1, %c0_2] : memref<32x32xbf16, #tpu.memory_space<vmem>>, vector<32x32xbf16>
    %cst = arith.constant dense<0.000000e+00> : vector<64x32xf32>
    %2 = tpu.matmul %0, %1, %cst {dimension_numbers = #tpu.dot_dimension_numbers<[1], [0], [0], [1], [0, 0, 1, 1], [], []>} : vector<64x32xbf16>, vector<32x32xbf16>, vector<64x32xf32> -> vector<64x32xf32>
    %c0_3 = arith.constant 0 : index
    %c0_4 = arith.constant 0 : index
    %3 = vector.load %arg5[%c0_3, %c0_4] : memref<32x32xbf16, #tpu.memory_space<vmem>>, vector<32x32xbf16>
    %c0_5 = arith.constant 0 : index
    %c0_6 = arith.constant 0 : index
    %4 = vector.load %arg2[%c0_5, %c0_6] : memref<32x128xbf16, #tpu.memory_space<vmem>>, vector<32x128xbf16>
    %cst_7 = arith.constant dense<0.000000e+00> : vector<32x128xf32>
    %5 = tpu.matmul %3, %4, %cst_7 {dimension_numbers = #tpu.dot_dimension_numbers<[1], [0], [0], [1], [0, 0, 1, 1], [], []>} : vector<32x32xbf16>, vector<32x128xbf16>, vector<32x128xf32> -> vector<32x128xf32>
    %c0_8 = arith.constant 0 : index
    %c0_9 = arith.constant 0 : index
    %6 = vector.load %arg3[%c0_8, %c0_9] : memref<128x32xbf16, #tpu.memory_space<vmem>>, vector<128x32xbf16>
    %c0_10 = arith.constant 0 : index
    %c0_11 = arith.constant 0 : index
    %7 = vector.load %arg6[%c0_10, %c0_11] : memref<32x32xbf16, #tpu.memory_space<vmem>>, vector<32x32xbf16>
    %cst_12 = arith.constant dense<0.000000e+00> : vector<128x32xf32>
    %8 = tpu.matmul %6, %7, %cst_12 {dimension_numbers = #tpu.dot_dimension_numbers<[1], [0], [0], [1], [0, 0, 1, 1], [], []>} : vector<128x32xbf16>, vector<32x32xbf16>, vector<128x32xf32> -> vector<128x32xf32>
    %c0_13 = arith.constant 0 : index
    %c0_14 = arith.constant 0 : index
    %9 = vector.load %arg9[%c0_13, %c0_14] : memref<32x128xf32, #tpu.memory_space<vmem>>, vector<32x128xf32>
    %10 = arith.mulf %5, %9 : vector<32x128xf32>
    %11 = arith.truncf %10 : vector<32x128xf32> to vector<32x128xbf16>
    %c0_15 = arith.constant 0 : index
    %c0_16 = arith.constant 0 : index
    %12 = vector.load %arg10[%c0_15, %c0_16] : memref<128x32xf32, #tpu.memory_space<vmem>>, vector<128x32xf32>
    %13 = arith.mulf %8, %12 : vector<128x32xf32>
    %14 = arith.truncf %13 : vector<128x32xf32> to vector<128x32xbf16>
    %c0_17 = arith.constant 0 : index
    %c0_18 = arith.constant 0 : index
    %15 = vector.load %arg7[%c0_17, %c0_18] : memref<32x32xbf16, #tpu.memory_space<vmem>>, vector<32x32xbf16>
    %cst_19 = arith.constant dense<0.000000e+00> : vector<128x32xf32>
    %16 = tpu.matmul %14, %15, %cst_19 {dimension_numbers = #tpu.dot_dimension_numbers<[1], [0], [0], [1], [0, 0, 1, 1], [], []>} : vector<128x32xbf16>, vector<32x32xbf16>, vector<128x32xf32> -> vector<128x32xf32>
    %17 = arith.truncf %16 : vector<128x32xf32> to vector<128x32xbf16>
    %18 = arith.truncf %2 : vector<64x32xf32> to vector<64x32xbf16>
    %cst_20 = arith.constant dense<0.000000e+00> : vector<64x128xf32>
    %19 = tpu.matmul %18, %11, %cst_20 {dimension_numbers = #tpu.dot_dimension_numbers<[1], [0], [0], [1], [0, 0, 1, 1], [], []>} : vector<64x32xbf16>, vector<32x128xbf16>, vector<64x128xf32> -> vector<64x128xf32>
    %c0_21 = arith.constant 0 : index
    %c0_22 = arith.constant 0 : index
    %20 = vector.load %arg12[%c0_21, %c0_22] : memref<64x128xf32, #tpu.memory_space<vmem>>, vector<64x128xf32>
    %21 = arith.addf %19, %20 : vector<64x128xf32>
    %cst_23 = arith.constant dense<0xFF800000> : vector<64xf32>
    %22 = vector.multi_reduction <maximumf>, %21, %cst_23 [1] : vector<64x128xf32> to vector<64xf32>
    %23 = vector.shape_cast %22 : vector<64xf32> to vector<64x1xf32>
    %24 = vector.broadcast %23 : vector<64x1xf32> to vector<64x128xf32>
    %25 = arith.subf %21, %24 : vector<64x128xf32>
    %26 = math.exp %25 : vector<64x128xf32>
    %27 = arith.truncf %26 : vector<64x128xf32> to vector<64x128xbf16>
    %c0_24 = arith.constant 0 : index
    %c0_25 = arith.constant 0 : index
    %28 = vector.load %arg11[%c0_24, %c0_25] : memref<128x128xbf16, #tpu.memory_space<vmem>>, vector<128x128xbf16>
    %cst_26 = arith.constant dense<0.000000e+00> : vector<64x128xf32>
    %29 = tpu.matmul %27, %28, %cst_26 {dimension_numbers = #tpu.dot_dimension_numbers<[1], [0], [0], [1], [0, 0, 1, 1], [], []>} : vector<64x128xbf16>, vector<128x128xbf16>, vector<64x128xf32> -> vector<64x128xf32>
    %cst_27 = arith.constant 9.99999968E-21 : f32
    %30 = vector.broadcast %cst_27 : f32 to vector<64x128xf32>
    %31 = arith.maximumf %29, %30 : vector<64x128xf32>
    %32 = tpu.reciprocal %31 {approx = true} : vector<64x128xf32> -> vector<64x128xf32>
    %33 = arith.mulf %26, %32 : vector<64x128xf32>
    %34 = arith.truncf %33 : vector<64x128xf32> to vector<64x128xbf16>
    %cst_28 = arith.constant dense<0.000000e+00> : vector<64x32xf32>
    %35 = tpu.matmul %34, %17, %cst_28 {dimension_numbers = #tpu.dot_dimension_numbers<[1], [0], [0], [1], [0, 0, 1, 1], [], []>} : vector<64x128xbf16>, vector<128x32xbf16>, vector<64x32xf32> -> vector<64x32xf32>
    %c0_29 = arith.constant 0 : index
    %c0_30 = arith.constant 0 : index
    %36 = vector.load %arg8[%c0_29, %c0_30] : memref<1x32xf32, #tpu.memory_space<vmem>>, vector<1x32xf32>
    %37 = vector.broadcast %36 : vector<1x32xf32> to vector<64x32xf32>
    %38 = arith.addf %35, %37 : vector<64x32xf32>
    %c0_31 = arith.constant 0 : index
    %c0_32 = arith.constant 0 : index
    %39 = vector.load %arg13[%c0_31, %c0_32] : memref<64x32xf32, #tpu.memory_space<vmem>>, vector<64x32xf32>
    tpu.vector_store %arg13[%c0_31, %c0_32], %38 {strides = array<i32>} : memref<64x32xf32, #tpu.memory_space<vmem>>, vector<64x32xf32>,
    return
  }
  func.func @transform_0(%arg0: i32) -> (i32, i32) {
    %c0_i32 = arith.constant 0 : i32
    %c0_i32_0 = arith.constant 0 : i32
    return %arg0, %c0_i32 : i32, i32
  }
  func.func @transform_1(%arg0: i32) -> (i32, i32) {
    %c0_i32 = arith.constant 0 : i32
    %c0_i32_0 = arith.constant 0 : i32
    %c0_i32_1 = arith.constant 0 : i32
    return %c0_i32, %c0_i32_0 : i32, i32
  }
  func.func @transform_2(%arg0: i32) -> (i32, i32) {
    %c0_i32 = arith.constant 0 : i32
    %c0_i32_0 = arith.constant 0 : i32
    %c0_i32_1 = arith.constant 0 : i32
    return %c0_i32, %c0_i32_0 : i32, i32
  }
  func.func @transform_3(%arg0: i32) -> (i32, i32) {
    %c0_i32 = arith.constant 0 : i32
    %c0_i32_0 = arith.constant 0 : i32
    %c0_i32_1 = arith.constant 0 : i32
    return %c0_i32, %c0_i32_0 : i32, i32
  }
  func.func @transform_4(%arg0: i32) -> (i32, i32) {
    %c0_i32 = arith.constant 0 : i32
    %c0_i32_0 = arith.constant 0 : i32
    %c0_i32_1 = arith.constant 0 : i32
    return %c0_i32, %c0_i32_0 : i32, i32
  }
  func.func @transform_5(%arg0: i32) -> (i32, i32) {
    %c0_i32 = arith.constant 0 : i32
    %c0_i32_0 = arith.constant 0 : i32
    %c0_i32_1 = arith.constant 0 : i32
    return %c0_i32, %c0_i32_0 : i32, i32
  }
  func.func @transform_6(%arg0: i32) -> (i32, i32) {
    %c0_i32 = arith.constant 0 : i32
    %c0_i32_0 = arith.constant 0 : i32
    %c0_i32_1 = arith.constant 0 : i32
    return %c0_i32, %c0_i32_0 : i32, i32
  }
  func.func @transform_7(%arg0: i32) -> (i32, i32) {
    %c0_i32 = arith.constant 0 : i32
    %c0_i32_0 = arith.constant 0 : i32
    %c0_i32_1 = arith.constant 0 : i32
    return %c0_i32, %c0_i32_0 : i32, i32
  }
  func.func @transform_8(%arg0: i32) -> (i32, i32) {
    %c0_i32 = arith.constant 0 : i32
    %c0_i32_0 = arith.constant 0 : i32
    %c0_i32_1 = arith.constant 0 : i32
    return %c0_i32, %c0_i32_0 : i32, i32
  }
  func.func @transform_9(%arg0: i32) -> (i32, i32) {
    %c0_i32 = arith.constant 0 : i32
    %c0_i32_0 = arith.constant 0 : i32
    %c0_i32_1 = arith.constant 0 : i32
    return %c0_i32, %c0_i32_0 : i32, i32
  }
  func.func @transform_10(%arg0: i32) -> (i32, i32) {
    %c0_i32 = arith.constant 0 : i32
    %c0_i32_0 = arith.constant 0 : i32
    %c0_i32_1 = arith.constant 0 : i32
    return %c0_i32, %c0_i32_0 : i32, i32
  }
  func.func @transform_11(%arg0: i32) -> (i32, i32) {
    %c0_i32 = arith.constant 0 : i32
    %c0_i32_0 = arith.constant 0 : i32
    return %arg0, %c0_i32 : i32, i32
  }
  func.func @transform_12(%arg0: i32) -> (i32, i32) {
    %c0_i32 = arith.constant 0 : i32
    %c0_i32_0 = arith.constant 0 : i32
    return %arg0, %c0_i32 : i32, i32
  }
}

</mosaic_0001>

<bundles_post_ra>
// kernel: tpu_custom_call.1
= control target key start
LH: loop header
LB: loop body
LE: loop exit
PB: predicated region body
PF: predicated region fallthrough
CT: control target
= control target key end

     0   :  { %17 = vsyncpa [#allocation3], 0  ;;  %s1939_s0 = inlined_call_operand.vmem [shape: bf16[128,32], index: 0, kind: input, shape index: {}]   ;;  %s1940_s1 = inlined_call_operand.vmem [shape: bf16[32,128], index: 1, kind: input, shape index: {}]   ;;  %s1941_s2 = inlined_call_operand.vmem [shape: bf16[128,32], index: 2, kind: input, shape index: {}]   ;;  %s1942_s3 = inlined_call_operand.vmem [shape: bf16[32,32], index: 3, kind: input, shape index: {}]   ;;  %s1943_s4 = inlined_call_operand.vmem [shape: bf16[32,32], index: 4, kind: input, shape index: {}]   ;;  %s1944_s5 = inlined_call_operand.hbm [shape: bf16[32,32], index: 5, kind: input, shape index: {}]   ;;  %s1945_s6 = inlined_call_operand.hbm [shape: bf16[32,32], index: 6, kind: input, shape index: {}]   ;;  %s1946_s7 = inlined_call_operand.vmem [shape: f32[1,32], index: 7, kind: input, shape index: {}]   ;;  %s1947_s8 = inlined_call_operand.vmem [shape: f32[32,128], index: 8, kind: input, shape index: {}]   ;;  %s1948_s9 = inlined_call_operand.vmem [shape: f32[128,32], index: 9, kind: input, shape index: {}]   ;;  %s1949_s10 = inlined_call_operand.vmem [shape: bf16[128,128], index: 10, kind: input, shape index: {}]   ;;  %s1950_s11 = inlined_call_operand.vmem [shape: f32[128,128], index: 11, kind: input, shape index: {}]   ;;  %s1951_s12 = inlined_call_operand.vmem [shape: f32[128,32], index: 12, kind: output, shape index: {}]  }
   0x1   :  { %18 = vsyncpa [#allocation5], 0  ;;  %s1666_s21 = smov 0  }
   0x2 LB: > { %s340_s24 = sshll.u32 %s1944_s5, 4  ;;  %s1256_s25 = sadd.s32 4294967295, %s1595_s21   ;;  %s1595_s21 = sphi %s1666_s21, %s24_s21   ;;  %s341_s24 = int_to_ptr.hbm [resolvable:$true] %s340_s24 }
   0x3   : > { %p1258_p0 = scmp.ge.s32.totalorder %s1595_s21, 1  ;;  %p317_p1 = scmp.lt.s32.totalorder %s1595_s21, 3 }
   0x4   : > { %p1677_p2 = scmp.eq.s32.totalorder %s1256_s25, 0  ;;  %s1597_s28 = smov [#allocation2]  }
   0x5   : > { %p1681_p3 = pnand %p1258_p0, %p317_p1  ;;  %s342_s29 = sshll.u32 %s1597_s28, 4  ;;  %s343_s29 = int_to_ptr.vmem [resolvable:$true] %s342_s29 }
   0x6   : > { %s354_s14 = sshll.u32 %s1945_s6, 4  ;;  %s1598_s15 = smov [#allocation4]   ;;  %s355_s14 = int_to_ptr.hbm [resolvable:$true] %s354_s14 }
   0x7   : > { %p1465_p4 = pneg %p1681_p3  ;;  %s356_s16 = sshll.u32 %s1598_s15, 4  ;;  %s357_s16 = int_to_ptr.vmem [resolvable:$true] %s356_s16 }
   0x8   : > { %s1599_s17 = smov 64   ;;  %s1600_s18 = smov 4  }
   0x9   : > { %p1466_p5 = pnand %p1677_p2, %p1465_p4  ;;  %402 = sbr.rel (%p1681_p3) target bundleno = 783 (0x30f), region = 68 }
   0xb   : > { %1468 = dma.hbm_to_vmem [thread:$0]  (!%p1466_p5), %s341_s24, 256, %s343_s29, [#allocation3], %s1599_s17, %s1599_s17, %s1600_s18  }
   0xc   : > { %1471 = dma.hbm_to_vmem [thread:$0]  (!%p1466_p5), %s355_s14, 256, %s357_s16, [#allocation5], %s1599_s17, %s1599_s17, %s1600_s18  }
   0xe   : > { %1586 = dma.done.wait (%p1677_p2), [#allocation3], 256  }
   0xf   : > { %1588 = vsyncadd (%p1677_p2), [#allocation3], 4294967040 }
  0x10   : > { %1590 = dma.done.wait (%p1677_p2), [#allocation5], 256  }
  0x11   : > { %1592 = vsyncadd (%p1677_p2), [#allocation5], 4294967040  ;;  %s1265_s19 = sshll.u32 %s1256_s25, 3  ;;  %v1428_v0 = vld [vmem:[%s1940_s1 + $0x8] sm:$0xff]  ;;  %v1427_v2 = vld [vmem:[%s1940_s1] sm:$0xff]  ;;  %vm518_vm0 = vcmask 261120  }
  0x12   : > { %p456_p6 = scmp.lt.s32.totalorder %s1265_s19, 15  ;;  %v1438_v1 = vld [vmem:[#allocation2 + $0x8] sm:$0xff]  ;;  %602 = vmatpush.bf16.msra.mxu1 %v1428_v0  ;;  %v1437_v3 = vld [vmem:[#allocation2] sm:$0xff]  ;;  %v1431_v12 = vld [vmem:[%s1941_s2 + $0x10] sm:$0xff] }
  0x13   : > { %717 = vmatpush.bf16.msra.mxu2 %v1438_v1  ;;  %v1424_v4 = vld [vmem:[%s1942_s3 + $0x8] sm:$0xff]  ;;  %v1423_v5 = vld [vmem:[%s1942_s3] sm:$0xff]  ;;  %v1432_v14 = vld [vmem:[%s1941_s2 + $0x18] sm:$0xff] }
  0x14   : > { %s1955_s19 = smov (!%p456_p6, %s1265_s19), 15  ;;  %537 = vmatpush.bf16.msra.mxu0 %v1424_v4  ;;  %v1425_v6 = vld [vmem:[%s1943_s4] sm:$0xff]  ;;  %v1426_v9 = vld [vmem:[%s1943_s4 + $0x8] sm:$0xff]  ;;  %v1435_v18 = vld [vmem:[%s1941_s2 + $0x30] sm:$0xff] }
  0x15   : > { %s1266_s23 = sshll.u32 %s1955_s19, 2  ;;  %v1429_v7 = vld [vmem:[%s1941_s2] sm:$0xff]  ;;  %v1430_v10 = vld [vmem:[%s1941_s2 + $0x8] sm:$0xff]  ;;  %v1440_v19 = vld [vmem:[#allocation4 + $0x8] sm:$0xff]  ;;  %s1268_s29 = sshll.u32 %s1955_s19, 3 }
  0x16   : > { %s459_s14 = scalar_lea.vmem %s1939_s0, %s1266_s23  ;;  %603 = vmatpush.bf16.msra.mxu1 %v1427_v2  ;;  %v1433_v16 = vld [vmem:[%s1941_s2 + $0x20] sm:$0xff]  ;;  %v1434_v17 = vld [vmem:[%s1941_s2 + $0x28] sm:$0xff]  ;;  %856 = vmatpush.bf16.msra.mxu3 %v1440_v19  ;;  %v1436_v20 = vld [vmem:[%s1941_s2 + $0x38] sm:$0xff]  ;;  %s1842_s15 = scalar_lea.vmem %s1950_s11, %s1268_s29 }
  0x17   : > { %718 = vmatpush.bf16.msra.mxu2 %v1437_v3  ;;  %v1419_v8 = vld [vmem:[%s459_s14] sm:$0xff]  ;;  %v1420_v11 = vld [vmem:[%s459_s14 + $0x8] sm:$0xff]  ;;  %v1421_v13 = vld [vmem:[%s459_s14 + $0x10] sm:$0xff]  ;;  %s471_s22 = scalar_lea.vmem %s1951_s12, %s1268_s29 }
  0x18   : > { %538 = vmatpush.bf16.msra.mxu0 %v1423_v5  ;;  %v1422_v15 = vld [vmem:[%s459_s14 + $0x18] sm:$0xff]  ;;  %v1439_v21 = vld [vmem:[#allocation4] sm:$0xff]  ;;  %v770_v26 = vld [vmem:[%s1948_s9] sm:$0xff] }
  0x19   : > { %1315 = vmatmul.msk.bf16.vlgmr.msra.gmra.mxu1 %vm518_vm0, %v1425_v6  ;;  %v771_v27 = vld [vmem:[%s1948_s9 + $0x8] sm:$0xff]  ;;  %v762_v34 = vld [vmem:[%s1947_s8 + $0x10] sm:$0xff]  ;;  %v763_v36 = vld [vmem:[%s1947_s8 + $0x18] sm:$0xff] }
  0x1a   : > { %1357 = vmatmul.msk.bf16.vlgmr.msra.gmra.mxu2 %vm518_vm0, %v1429_v7  ;;  %857 = vmatpush.bf16.msra.mxu3 %v1439_v21  ;;  %v761_v37 = vld [vmem:[%s1947_s8 + $0x8] sm:$0xff]  ;;  %v760_v41 = vld [vmem:[%s1947_s8] sm:$0xff]  ;;  %v772_v42 = vld [vmem:[%s1948_s9 + $0x10] sm:$0xff] }
  0x1b   : > { %1295 = vmatmul.msk.bf16.vlgmr.msra.gmra.mxu0 %vm518_vm0, %v1419_v8  ;;  %v773_v45 = vld [vmem:[%s1948_s9 + $0x18] sm:$0xff]  ;;  %v774_v56 = vld [vmem:[%s1948_s9 + $0x20] sm:$0xff]  ;;  %v775_v57 = vld [vmem:[%s1948_s9 + $0x28] sm:$0xff] }
  0x1c   : > { %v776_v1 = vld [vmem:[%s1948_s9 + $0x30] sm:$0xff]  ;;  %v777_v3 = vld [vmem:[%s1948_s9 + $0x38] sm:$0xff] }
  0x1d   : > { %v781_v21 = vld [vmem:[%s1948_s9 + $0x58] sm:$0xff] }
  0x29   : > { %1316 = vmatmul.msk.bf16.gmra.mxu1 %vm518_vm0, %v1426_v9 }
  0x2a   : > { %1358 = vmatmul.msk.bf16.gmra.mxu2 %vm518_vm0, %v1430_v10 }
  0x2b   : > { %1296 = vmatmul.msk.bf16.gmra.mxu0 %vm518_vm0, %v1420_v11  ;;  %v778_v11 = vld [vmem:[%s1948_s9 + $0x40] sm:$0xff] }
  0x3a   : > { %1359 = vmatmul.msk.bf16.gmra.mxu2 %vm518_vm0, %v1431_v12  ;;  %v779_v12 = vld [vmem:[%s1948_s9 + $0x48] sm:$0xff] }
  0x3b   : > { %1297 = vmatmul.msk.bf16.gmra.mxu0 %vm518_vm0, %v1421_v13 }
  0x4a   : > { %1360 = vmatmul.msk.bf16.gmra.mxu2 %vm518_vm0, %v1432_v14 }
  0x4b   : > { %1298 = vmatmul.msk.bf16.gmra.mxu0 %vm518_vm0, %v1422_v15 }
  0x5a   : > { %1361 = vmatmul.msk.bf16.gmra.mxu2 %vm518_vm0, %v1433_v16 }
  0x6a   : > { %1362 = vmatmul.msk.bf16.gmra.mxu2 %vm518_vm0, %v1434_v17 }
  0x7a   : > { %1363 = vmatmul.msk.bf16.gmra.mxu2 %vm518_vm0, %v1435_v18 }
  0x8a   : > { %1364 = vmatmul.msk.bf16.gmra.mxu2 %vm518_vm0, %v1436_v20  ;;  %v780_v20 = vld [vmem:[%s1948_s9 + $0x50] sm:$0xff] }
  0x96   : > { %v605_v22 = vpop.f32.mrf.mxu1 }
  0x97   : > { %v764_v46 = vmul.f32 %v760_v41, %v605_v22 }
  0x98   : > { %v540_v25 = vpop.f32.mrf.mxu0 }
  0x9d   : > { %v720_v23 = vpop.f32.mrf.mxu2 }
  0x9e   : > { %v607_v24 = vpop.f32.mrf.mxu1  ;;  %v786_v28 = vmul.f32 %v770_v26, %v720_v23 }
  0x9f   : > { %v765_v43 = vmul.f32 %v761_v37, %v607_v24 }
  0xa0   : > { %v542_v33 = vpop.f32.mrf.mxu0 }
  0xa1   : > { %v768_v51 = vpack.c.bf16 %v765_v43, %v764_v46  ;;  %v907_v53 = vpack.c.bf16 %v542_v33, %v540_v25  ;;  %v911_v43 = vld [vmem:[%s1842_s15] sm:$0xff] }
  0xa5   : > { %v722_v29 = vpop.f32.mrf.mxu2 }
  0xa6   : > { %v787_v30 = vmul.f32 %v771_v27, %v722_v29  ;;  %v610_v31 = vpop.f32.mrf.mxu1  ;;  %v782_v27 = vld [vmem:[%s1948_s9 + $0x60] sm:$0xff] }
  0xa7   : > { %v766_v39 = vmul.f32 %v762_v34, %v610_v31  ;;  %v784_v34 = vld [vmem:[%s1948_s9 + $0x70] sm:$0xff] }
  0xa8   : > { %v802_v32 = vpack.c.bf16 %v787_v30, %v786_v28  ;;  %v545_v48 = vpop.f32.mrf.mxu0  ;;  %v783_v28 = vld [vmem:[%s1948_s9 + $0x68] sm:$0xff] }
  0xaa   : > { %1373 = vmatmul.msk.bf16.vlgmr.msra.gmra.mxu3 %vm518_vm0, %v802_v32 }
  0xad   : > { %v725_v35 = vpop.f32.mrf.mxu2 }
  0xae   : > { %v612_v38 = vpop.f32.mrf.mxu1  ;;  %v788_v47 = vmul.f32 %v772_v42, %v725_v35  ;;  %v785_v35 = vld [vmem:[%s1948_s9 + $0x78] sm:$0xff] }
  0xaf   : > { %v767_v40 = vmul.f32 %v763_v36, %v612_v38 }
  0xb0   : > { %v547_v55 = vpop.f32.mrf.mxu0 }
  0xb1   : > { %v769_v44 = vpack.c.bf16 %v767_v40, %v766_v39  ;;  %v908_v63 = vpack.c.bf16 %v547_v55, %v545_v48 }
  0xb3   : > { %937 = vmatpush.bf16.msrb.mxu1 %v769_v44 }
  0xb5   : > { %v727_v49 = vpop.f32.mrf.mxu2 }
  0xb6   : > { %v789_v50 = vmul.f32 %v773_v45, %v727_v49 }
  0xb7   : > { %938 = vmatpush.bf16.msrb.mxu1 %v768_v51 }
  0xb8   : > { %v803_v52 = vpack.c.bf16 %v789_v50, %v788_v47  ;;  %v550_v62 = vpop.f32.mrf.mxu0  ;;  %v912_v47 = vld [vmem:[%s1842_s15 + $0x8] sm:$0xff] }
  0xba   : > { %1374 = vmatmul.msk.bf16.gmra.mxu3 %vm518_vm0, %v803_v52  ;;  %1381 = vmatmul.msk.bf16.vlgmr.msrb.gmra.mxu1 %vm518_vm0, %v907_v53  ;;  %v913_v52 = vld [vmem:[%s1842_s15 + $0x10] sm:$0xff] }
  0xbd   : > { %v730_v54 = vpop.f32.mrf.mxu2 }
  0xbe   : > { %v790_v58 = vmul.f32 %v774_v56, %v730_v54  ;;  %v914_v56 = vld [vmem:[%s1842_s15 + $0x18] sm:$0xff] }
  0xc0   : > { %v552_v2 = vpop.f32.mrf.mxu0 }
  0xc1   : > { %v909_v8 = vpack.c.bf16 %v552_v2, %v550_v62 }
  0xc5   : > { %v732_v59 = vpop.f32.mrf.mxu2 }
  0xc6   : > { %v791_v60 = vmul.f32 %v775_v57, %v732_v59 }
  0xc8   : > { %v804_v61 = vpack.c.bf16 %v791_v60, %v790_v58  ;;  %v555_v9 = vpop.f32.mrf.mxu0 }
  0xca   : > { %1375 = vmatmul.msk.bf16.gmra.mxu3 %vm518_vm0, %v804_v61  ;;  %1382 = vmatmul.msk.bf16.gmra.mxu1 %vm518_vm0, %v908_v63  ;;  %v915_v61 = vld [vmem:[%s1842_s15 + $0x20] sm:$0xff] }
  0xcd   : > { %v735_v0 = vpop.f32.mrf.mxu2 }
  0xce   : > { %v792_v4 = vmul.f32 %v776_v1, %v735_v0  ;;  %v916_v1 = vld [vmem:[%s1842_s15 + $0x28] sm:$0xff] }
  0xd0   : > { %v557_v16 = vpop.f32.mrf.mxu0 }
  0xd1   : > { %v910_v18 = vpack.c.bf16 %v557_v16, %v555_v9 }
  0xd5   : > { %v737_v5 = vpop.f32.mrf.mxu2 }
  0xd6   : > { %v793_v6 = vmul.f32 %v777_v3, %v737_v5 }
  0xd8   : > { %v805_v7 = vpack.c.bf16 %v793_v6, %v792_v4  ;;  %v917_v6 = vld [vmem:[%s1842_s15 + $0x30] sm:$0xff] }
  0xda   : > { %1376 = vmatmul.msk.bf16.gmra.mxu3 %vm518_vm0, %v805_v7  ;;  %1383 = vmatmul.msk.bf16.gmra.mxu1 %vm518_vm0, %v909_v8  ;;  %v1448_v7 = vld [vmem:[%s1949_s10 + $0x38] sm:$0xff] }
  0xdb   : > { %1068 = vmatpush.bf16.msrb.mxu0 %v1448_v7 }
  0xdd   : > { %v740_v10 = vpop.f32.mrf.mxu2 }
  0xde   : > { %v794_v13 = vmul.f32 %v778_v11, %v740_v10  ;;  %v1447_v11 = vld [vmem:[%s1949_s10 + $0x30] sm:$0xff] }
  0xdf   : > { %1069 = vmatpush.bf16.msrb.mxu0 %v1447_v11 }
  0xe5   : > { %v742_v14 = vpop.f32.mrf.mxu2 }
  0xe6   : > { %v795_v15 = vmul.f32 %v779_v12, %v742_v14  ;;  %v918_v12 = vld [vmem:[%s1842_s15 + $0x38] sm:$0xff] }
  0xe8   : > { %v806_v17 = vpack.c.bf16 %v795_v15, %v794_v13  ;;  %v1446_v13 = vld [vmem:[%s1949_s10 + $0x28] sm:$0xff] }
  0xe9   : > { %1070 = vmatpush.bf16.msrb.mxu0 %v1446_v13 }
  0xea   : > { %1377 = vmatmul.msk.bf16.gmra.mxu3 %vm518_vm0, %v806_v17  ;;  %1384 = vmatmul.msk.bf16.gmra.mxu1 %vm518_vm0, %v910_v18  ;;  %v1445_v17 = vld [vmem:[%s1949_s10 + $0x20] sm:$0xff]  ;;  %v1444_v18 = vld [vmem:[%s1949_s10 + $0x18] sm:$0xff] }
  0xed   : > { %v745_v19 = vpop.f32.mrf.mxu2  ;;  %1071 = vmatpush.bf16.msrb.mxu0 %v1445_v17 }
  0xee   : > { %v796_v22 = vmul.f32 %v780_v20, %v745_v19  ;;  %v1443_v20 = vld [vmem:[%s1949_s10 + $0x10] sm:$0xff] }
  0xf1   : > { %1072 = vmatpush.bf16.msrb.mxu0 %v1444_v18 }
  0xf5   : > { %v747_v23 = vpop.f32.mrf.mxu2  ;;  %1073 = vmatpush.bf16.msrb.mxu0 %v1443_v20 }
  0xf6   : > { %v797_v24 = vmul.f32 %v781_v21, %v747_v23  ;;  %v1442_v21 = vld [vmem:[%s1949_s10 + $0x8] sm:$0xff]  ;;  %v1441_v23 = vld [vmem:[%s1949_s10] sm:$0xff] }
  0xf8   : > { %v807_v25 = vpack.c.bf16 %v797_v24, %v796_v22 }
  0xf9   : > { %1074 = vmatpush.bf16.msrb.mxu0 %v1442_v21 }
  0xfa   : > { %1378 = vmatmul.msk.bf16.gmra.mxu3 %vm518_vm0, %v807_v25 }
  0xfd   : > { %v750_v26 = vpop.f32.mrf.mxu2  ;;  %1075 = vmatpush.bf16.msrb.mxu0 %v1441_v23 }
  0xfe   : > { %v798_v29 = vmul.f32 %v782_v27, %v750_v26 }
 0x105   : > { %v752_v30 = vpop.f32.mrf.mxu2 }
 0x106   : > { %v799_v31 = vmul.f32 %v783_v28, %v752_v30 }
 0x108   : > { %v808_v32 = vpack.c.bf16 %v799_v31, %v798_v29 }
 0x10a   : > { %1379 = vmatmul.msk.bf16.gmra.mxu3 %vm518_vm0, %v808_v32 }
 0x10d   : > { %v755_v33 = vpop.f32.mrf.mxu2 }
 0x10e   : > { %v800_v36 = vmul.f32 %v784_v34, %v755_v33 }
 0x115   : > { %v757_v37 = vpop.f32.mrf.mxu2 }
 0x116   : > { %v801_v38 = vmul.f32 %v785_v35, %v757_v37 }
 0x118   : > { %v809_v39 = vpack.c.bf16 %v801_v38, %v800_v36 }
 0x11a   : > { %1380 = vmatmul.msk.bf16.gmra.mxu3 %vm518_vm0, %v809_v39 }
 0x12d   : > { %v859_v40 = vpop.f32.mrf.mxu3 }
 0x135   : > { %v861_v41 = vpop.f32.mrf.mxu3 }
 0x136   : > { %v1844_v42 = vpack.c.bf16 %v861_v41, %v859_v40 }
 0x137   : > { %v940_v44 = vpop.f32.mrf.mxu1 }
 0x138   : > { %v1847_v45 = vadd.f32 %v940_v44, %v911_v43 }
 0x13a   : > { %960 = vmax.xlane.f32.xlu0 %v1847_v45 }
 0x13d   : > { %v864_v46 = vpop.f32.mrf.mxu3 }
 0x13f   : > { %v942_v48 = vpop.f32.mrf.mxu1 }
 0x140   : > { %v1851_v49 = vadd.f32 %v942_v48, %v912_v47 }
 0x142   : > { %962 = vmax.xlane.f32.xlu0 %v1851_v49 }
 0x145   : > { %v866_v50 = vpop.f32.mrf.mxu3 }
 0x146   : > { %v1854_v51 = vpack.c.bf16 %v866_v50, %v864_v46 }
 0x147   : > { %v945_v53 = vpop.f32.mrf.mxu1 }
 0x148   : > { %v1857_v54 = vadd.f32 %v945_v53, %v913_v52 }
 0x14a   : > { %964 = vmax.xlane.f32.xlu1 %v1857_v54 }
 0x14d   : > { %v869_v55 = vpop.f32.mrf.mxu3 }
 0x14f   : > { %v947_v57 = vpop.f32.mrf.mxu1 }
 0x150   : > { %v1861_v58 = vadd.f32 %v947_v57, %v914_v56 }
 0x152   : > { %966 = vmax.xlane.f32.xlu1 %v1861_v58 }
 0x155   : > { %v871_v59 = vpop.f32.mrf.mxu3 }
 0x156   : > { %v1864_v60 = vpack.c.bf16 %v871_v59, %v869_v55 }
 0x157   : > { %v950_v62 = vpop.f32.mrf.mxu1 }
 0x158   : > { %v1867_v63 = vadd.f32 %v950_v62, %v915_v61 }
 0x15a   : > { %968 = vmax.xlane.f32.xlu2 %v1867_v63 }
 0x15d   : > { %v874_v0 = vpop.f32.mrf.mxu3 }
 0x15f   : > { %v952_v2 = vpop.f32.mrf.mxu1 }
 0x160   : > { %v1871_v3 = vadd.f32 %v952_v2, %v916_v1 }
 0x162   : > { %970 = vmax.xlane.f32.xlu2 %v1871_v3 }
 0x165   : > { %v876_v4 = vpop.f32.mrf.mxu3 }
 0x166   : > { %v902_v5 = vpack.c.bf16 %v876_v4, %v874_v0 }
 0x167   : > { %v955_v8 = vpop.f32.mrf.mxu1 }
 0x168   : > { %v1878_v9 = vadd.f32 %v955_v8, %v917_v6 }
 0x16a   : > { %972 = vmax.xlane.f32.xlu0 %v1878_v9 }
 0x16d   : > { %v879_v10 = vpop.f32.mrf.mxu3 }
 0x16f   : > { %v957_v14 = vpop.f32.mrf.mxu1 }
 0x170   : > { %v1888_v15 = vadd.f32 %v957_v14, %v918_v12 }
 0x172   : > { %974 = vmax.xlane.f32.xlu1 %v1888_v15 }
 0x175   : > { %v881_v16 = vpop.f32.mrf.mxu3 }
 0x176   : > { %v903_v32 = vpack.c.bf16 %v881_v16, %v879_v10 }
 0x17d   : > { %v884_v19 = vpop.f32.mrf.mxu3 }
 0x185   : > { %v886_v22 = vpop.f32.mrf.mxu3 }
 0x186   : > { %v904_v30 = vpack.c.bf16 %v886_v22, %v884_v19 }
 0x18d   : > { %v889_v24 = vpop.f32.mrf.mxu3 }
 0x195   : > { %v891_v25 = vpop.f32.mrf.mxu3 }
 0x196   : > { %v905_v29 = vpack.c.bf16 %v891_v25, %v889_v24 }
 0x19d   : > { %v894_v26 = vpop.f32.mrf.mxu3 }
 0x1a5   : > { %v896_v27 = vpop.f32.mrf.mxu3 }
 0x1a6   : > { %v906_v28 = vpack.c.bf16 %v896_v27, %v894_v26 }
 0x1a8   : > { %1129 = vmatpush.bf16.msra.mxu0 %v906_v28  ;;  %1449 = vmatpush.bf16.msra.mxu1 %v906_v28 }
 0x1ac   : > { %1130 = vmatpush.bf16.msra.mxu0 %v905_v29  ;;  %1450 = vmatpush.bf16.msra.mxu1 %v905_v29 }
 0x1ad   : > { %v961_v31 = vpop.xlane.xlu0 %960 }
 0x1ae   : > { %v976_v33 = vsub.f32 %v1847_v45, %v961_v31 }
 0x1b0   : > { %1131 = vmatpush.bf16.msra.mxu0 %v904_v30  ;;  %1451 = vmatpush.bf16.msra.mxu1 %v904_v30  ;;  %v984_v34 = vmul.f32 1.442695, %v976_v33 }
 0x1b2   : > { %1489 = vpow2.f32 %v984_v34 }
 0x1b4   : > { %1132 = vmatpush.bf16.msra.mxu0 %v903_v32  ;;  %1452 = vmatpush.bf16.msra.mxu1 %v903_v32 }
 0x1b5   : > { %v963_v35 = vpop.xlane.xlu0 %962 }
 0x1b6   : > { %v977_v36 = vsub.f32 %v1851_v49, %v963_v35 }
 0x1b8   : > { %1133 = vmatpush.bf16.msra.mxu0 %v902_v5  ;;  %1453 = vmatpush.bf16.msra.mxu1 %v902_v5  ;;  %v986_v37 = vmul.f32 1.442695, %v977_v36  ;;  %v1490_v39 = vpop.eup %1489 }
 0x1ba   : > { %1491 = vpow2.f32 %v986_v37 }
 0x1bc   : > { %1134 = vmatpush.bf16.msra.mxu0 %v1864_v60  ;;  %1454 = vmatpush.bf16.msra.mxu1 %v1864_v60 }
 0x1bd   : > { %v965_v38 = vpop.xlane.xlu1 %964 }
 0x1be   : > { %v978_v41 = vsub.f32 %v1857_v54, %v965_v38 }
 0x1c0   : > { %1135 = vmatpush.bf16.msra.mxu0 %v1854_v51  ;;  %1455 = vmatpush.bf16.msra.mxu1 %v1854_v51  ;;  %v1492_v40 = vpop.eup %1491  ;;  %v988_v44 = vmul.f32 1.442695, %v978_v41 }
 0x1c1   : > { %v1000_v43 = vpack.c.bf16 %v1492_v40, %v1490_v39 }
 0x1c2   : > { %1493 = vpow2.f32 %v988_v44 }
 0x1c3   : > { %1076 = vmatmul.bf16.vlgmr.msrb.gmra.mxu0 %v1000_v43 }
 0x1c4   : > { %1456 = vmatpush.bf16.msra.mxu1 %v1844_v42  ;;  %1136 = vmatpush.bf16.msra.mxu0 %v1844_v42 }
 0x1c5   : > { %v967_v45 = vpop.xlane.xlu1 %966 }
 0x1c6   : > { %v979_v46 = vsub.f32 %v1861_v58, %v967_v45 }
 0x1c8   : > { %v990_v47 = vmul.f32 1.442695, %v979_v46  ;;  %v1494_v49 = vpop.eup %1493 }
 0x1ca   : > { %1495 = vpow2.f32 %v990_v47 }
 0x1cd   : > { %v969_v48 = vpop.xlane.xlu2 %968 }
 0x1ce   : > { %v980_v51 = vsub.f32 %v1867_v63, %v969_v48 }
 0x1d0   : > { %v1496_v50 = vpop.eup %1495  ;;  %v992_v53 = vmul.f32 1.442695, %v980_v51 }
 0x1d1   : > { %v1001_v52 = vpack.c.bf16 %v1496_v50, %v1494_v49 }
 0x1d2   : > { %1497 = vpow2.f32 %v992_v53 }
 0x1d3   : > { %1081 = vmatmul.bf16.gmra.mxu0 %v1001_v52 }
 0x1d5   : > { %v971_v54 = vpop.xlane.xlu2 %970 }
 0x1d6   : > { %v981_v55 = vsub.f32 %v1871_v3, %v971_v54 }
 0x1d8   : > { %v994_v56 = vmul.f32 1.442695, %v981_v55  ;;  %v1498_v57 = vpop.eup %1497 }
 0x1da   : > { %1499 = vpow2.f32 %v994_v56 }
 0x1dd   : > { %v973_v42 = vpop.xlane.xlu0 %972 }
 0x1de   : > { %v982_v59 = vsub.f32 %v1878_v9, %v973_v42 }
 0x1e0   : > { %v1500_v58 = vpop.eup %1499  ;;  %v996_v61 = vmul.f32 1.442695, %v982_v59 }
 0x1e1   : > { %v1002_v60 = vpack.c.bf16 %v1500_v58, %v1498_v57 }
 0x1e2   : > { %1501 = vpow2.f32 %v996_v61 }
 0x1e3   : > { %1086 = vmatmul.bf16.gmra.mxu0 %v1002_v60 }
 0x1e5   : > { %v975_v62 = vpop.xlane.xlu1 %974 }
 0x1e6   : > { %v983_v63 = vsub.f32 %v1888_v15, %v975_v62 }
 0x1e8   : > { %v998_v0 = vmul.f32 1.442695, %v983_v63  ;;  %v1502_v1 = vpop.eup %1501 }
 0x1ea   : > { %1503 = vpow2.f32 %v998_v0 }
 0x1f0   : > { %v1504_v2 = vpop.eup %1503 }
 0x1f1   : > { %v1003_v3 = vpack.c.bf16 %v1504_v2, %v1502_v1 }
 0x1f3   : > { %1091 = vmatmul.bf16.gmra.mxu0 %v1003_v3 }
 0x240   : > { %v1077_v4 = vpop.f32.mrf.mxu0 }
 0x241   : > { %v1097_v5 = vmax.f32 %v1077_v4, 1e-20 }
 0x243   : > { %1505 = vrcp.f32 %v1097_v5 }
 0x248   : > { %v1079_v6 = vpop.f32.mrf.mxu0 }
 0x249   : > { %v1098_v7 = vmax.f32 %v1079_v6, 1e-20  ;;  %v1506_v8 = vpop.eup %1505 }
 0x24a   : > { %v1113_v11 = vmul.f32 %v1506_v8, %v1490_v39 }
 0x24b   : > { %1507 = vrcp.f32 %v1098_v7 }
 0x250   : > { %v1082_v9 = vpop.f32.mrf.mxu0 }
 0x251   : > { %v1508_v10 = vpop.eup %1507  ;;  %v1099_v14 = vmax.f32 %v1082_v9, 1e-20 }
 0x252   : > { %v1114_v12 = vmul.f32 %v1508_v10, %v1492_v40  ;;  %v1488_v40 = vld [vmem:[%s1946_s7] ss:$0 sm:$0xff] }
 0x253   : > { %1509 = vrcp.f32 %v1099_v14 }
 0x254   : > { %v1121_v13 = vpack.c.bf16 %v1114_v12, %v1113_v11 }
 0x256   : > { %1137 = vmatmul.bf16.vlgmr.msra.gmra.mxu0 %v1121_v13 }
 0x258   : > { %v1084_v15 = vpop.f32.mrf.mxu0 }
 0x259   : > { %v1100_v16 = vmax.f32 %v1084_v15, 1e-20  ;;  %v1510_v17 = vpop.eup %1509 }
 0x25a   : > { %v1115_v20 = vmul.f32 %v1510_v17, %v1494_v49 }
 0x25b   : > { %1511 = vrcp.f32 %v1100_v16 }
 0x260   : > { %v1087_v18 = vpop.f32.mrf.mxu0 }
 0x261   : > { %v1512_v19 = vpop.eup %1511  ;;  %v1101_v23 = vmax.f32 %v1087_v18, 1e-20 }
 0x262   : > { %v1116_v21 = vmul.f32 %v1512_v19, %v1496_v50 }
 0x263   : > { %1513 = vrcp.f32 %v1101_v23 }
 0x264   : > { %v1122_v22 = vpack.c.bf16 %v1116_v21, %v1115_v20 }
 0x266   : > { %1142 = vmatmul.bf16.vlgmr.msra.gmra.mxu1 %v1122_v22 }
 0x268   : > { %v1089_v24 = vpop.f32.mrf.mxu0 }
 0x269   : > { %v1102_v25 = vmax.f32 %v1089_v24, 1e-20  ;;  %v1514_v26 = vpop.eup %1513 }
 0x26a   : > { %v1117_v29 = vmul.f32 %v1514_v26, %v1498_v57 }
 0x26b   : > { %1515 = vrcp.f32 %v1102_v25 }
 0x270   : > { %v1092_v27 = vpop.f32.mrf.mxu0 }
 0x271   : > { %v1516_v28 = vpop.eup %1515  ;;  %v1103_v32 = vmax.f32 %v1092_v27, 1e-20 }
 0x272   : > { %v1118_v30 = vmul.f32 %v1516_v28, %v1500_v58 }
 0x273   : > { %1517 = vrcp.f32 %v1103_v32 }
 0x274   : > { %v1123_v31 = vpack.c.bf16 %v1118_v30, %v1117_v29 }
 0x276   : > { %1147 = vmatmul.bf16.gmra.mxu1 %v1123_v31 }
 0x278   : > { %v1094_v33 = vpop.f32.mrf.mxu0 }
 0x279   : > { %v1104_v34 = vmax.f32 %v1094_v33, 1e-20  ;;  %v1518_v35 = vpop.eup %1517 }
 0x27a   : > { %v1119_v37 = vmul.f32 %v1518_v35, %v1502_v1 }
 0x27b   : > { %1519 = vrcp.f32 %v1104_v34 }
 0x281   : > { %v1520_v36 = vpop.eup %1519 }
 0x282   : > { %v1120_v38 = vmul.f32 %v1520_v36, %v1504_v2 }
 0x284   : > { %v1124_v39 = vpack.c.bf16 %v1120_v38, %v1119_v37 }
 0x286   : > { %1152 = vmatmul.bf16.gmra.mxu1 %v1124_v39 }
 0x2d3   : > { %v1138_v41 = vpop.f32.mrf.mxu0 }
 0x2d4   : > { %v1139_v43 = vadd.f32 %v1488_v40, %v1138_v41 }
 0x2d6   : > { %1158 = vst.msk [vmem:[%s471_s22] sm:$0xff] %vm518_vm0, %v1139_v43 }
 0x2db   : > { %v1140_v44 = vpop.f32.mrf.mxu0 }
 0x2dc   : > { %v1141_v45 = vadd.f32 %v1488_v40, %v1140_v44 }
 0x2de   : > { %1159 = vst.msk [vmem:[%s471_s22 + $0x8] sm:$0xff] %vm518_vm0, %v1141_v45 }
 0x2e3   : > { %v1143_v46 = vpop.f32.mrf.mxu1 }
 0x2e4   : > { %v1144_v47 = vadd.f32 %v1488_v40, %v1143_v46 }
 0x2e6   : > { %1160 = vst.msk [vmem:[%s471_s22 + $0x10] sm:$0xff] %vm518_vm0, %v1144_v47 }
 0x2eb   : > { %v1145_v48 = vpop.f32.mrf.mxu1 }
 0x2ec   : > { %v1146_v49 = vadd.f32 %v1488_v40, %v1145_v48 }
 0x2ee   : > { %1161 = vst.msk [vmem:[%s471_s22 + $0x18] sm:$0xff] %vm518_vm0, %v1146_v49 }
 0x2f3   : > { %v1148_v50 = vpop.f32.mrf.mxu1 }
 0x2f4   : > { %v1149_v51 = vadd.f32 %v1488_v40, %v1148_v50 }
 0x2f6   : > { %1162 = vst.msk [vmem:[%s471_s22 + $0x20] sm:$0xff] %vm518_vm0, %v1149_v51 }
 0x2fb   : > { %v1150_v52 = vpop.f32.mrf.mxu1 }
 0x2fc   : > { %v1151_v53 = vadd.f32 %v1488_v40, %v1150_v52 }
 0x2fe   : > { %1163 = vst.msk [vmem:[%s471_s22 + $0x28] sm:$0xff] %vm518_vm0, %v1151_v53 }
 0x303   : > { %v1153_v54 = vpop.f32.mrf.mxu1 }
 0x304   : > { %v1154_v55 = vadd.f32 %v1488_v40, %v1153_v54 }
 0x306   : > { %1164 = vst.msk [vmem:[%s471_s22 + $0x30] sm:$0xff] %vm518_vm0, %v1154_v55 }
 0x30b   : > { %v1155_v56 = vpop.f32.mrf.mxu1 }
 0x30c   : > { %v1156_v42 = vadd.f32 %v1488_v40, %v1155_v56 }
 0x30e   : > { %1165 = vst.msk [vmem:[%s471_s22 + $0x38] sm:$0xff] %vm518_vm0, %v1156_v42 }
 0x30f PF: > { %s24_s21 = sadd.s32 1, %s1595_s21  }
 0x310   : > { %p21_p7 = scmp.ge.s32.totalorder %s24_s21, 4  }
 0x312   :  { %23 = sbr.rel (!%p21_p7) target bundleno = 2 (0x2), region = 110 }
 0x317   :  { %1188 = vsyncpa [#allocation3], 1 }
 0x318   :  { %1190 = vsyncpa [#allocation3 + $0x1], 1 }
 0x319   :  { %1191 = vsyncpa [#allocation5], 1 }

</bundles_post_ra>
